<compile_context>
chip_gen: v5e
topology: v5e:2x2
jax: 0.10.0
libtpu: 0.0.40
codegen_flags: <defaults>
</compile_context>

<pallas_src>
import functools

import numpy as np
import jax
import jax.numpy as jnp
from jax import lax
from jax.experimental import pallas as pl
from jax.experimental.pallas import tpu as pltpu


def _round_up(x, m):
    return ((x + m - 1) // m) * m


def meanstd_kernel(x_ref, out_ref, sum_acc, sq_acc, *, l_total, l_tile):
    k = pl.program_id(1)
    nk = pl.num_programs(1)

    @pl.when(k == 0)
    def _():
        sum_acc[...] = jnp.zeros_like(sum_acc)
        sq_acc[...] = jnp.zeros_like(sq_acc)

    rows = sum_acc.shape[0]
    num_slabs = l_tile // 128                 # l_tile is always a multiple of 128
    needs_mask = (l_total % l_tile) != 0      # static decision

    if needs_mask:
        # Hoisted (1, 128) lane iota; per slab we only add a scalar and compare.
        lane = lax.broadcasted_iota(jnp.int32, (1, 128), 1)
        base = k * l_tile                     # element offset of this L tile

    def body(j, carry):
        s, q = carry
        start = pl.multiple_of(j * 128, 128)
        # Per-slab load + widen: never materialize the whole block as f32.
        xs = x_ref[:, pl.ds(start, 128)].astype(jnp.float32)
        if needs_mask:
            valid = (base + j * 128 + lane) < l_total       # (1, 128) bool
            xs = jnp.where(valid, xs, jnp.float32(0.0))
        return s + xs, q + xs * xs

    init = (jnp.zeros((rows, 128), jnp.float32),
            jnp.zeros((rows, 128), jnp.float32))
    partial_s, partial_q = lax.fori_loop(0, num_slabs, body, init,
                                         unroll=min(8, num_slabs))

    sum_acc[...] += partial_s
    sq_acc[...] += partial_q

    # Finalize: single cross-lane reduce + divide, write mean|var in one block.
    @pl.when(k == nk - 1)
    def _():
        inv_l = jnp.float32(1.0 / l_total)
        mean = jnp.sum(sum_acc[...], axis=1, keepdims=True) * inv_l   # (rows, 1)
        msq = jnp.sum(sq_acc[...], axis=1, keepdims=True) * inv_l     # (rows, 1)
        var = msq - mean * mean
        out_ref[...] = jnp.concatenate([mean, var], axis=1).astype(out_ref.dtype)


def mean_std(x):
    """x: (N, C, H, W) -> (N, 2C), matching MeanStd.forward."""
    N, C = int(x.shape[0]), int(x.shape[1])
    L = int(np.prod(x.shape[2:])) if x.ndim > 2 else 1
    R = N * C
    x2 = x.reshape(R, L)

    itemsize = jnp.dtype(x.dtype).itemsize
    # Sub-32-bit dtypes pack along sublanes; keep row_tile a packed multiple.
    sub = {4: 8, 2: 16, 1: 32}.get(itemsize, 8)

    # Lane-dense L chunks (multiple of 128); sized so a double-buffered input
    # block stays well under the v7x 64 MiB VMEM while still giving large DMAs.
    l_tile = min(4096, _round_up(L, 128))
    row_tile = min(128, _round_up(R, sub))
    # Make sure the "parallel" rows axis has >= 2 blocks when possible so both
    # v7x TensorCores get work.
    if pl.cdiv(R, row_tile) == 1 and R >= 2 * sub:
        row_tile = _round_up((R + 1) // 2, sub)

    grid = (pl.cdiv(R, row_tile), pl.cdiv(L, l_tile))

    kernel = functools.partial(meanstd_kernel, l_total=L, l_tile=l_tile)

    out2 = pl.pallas_call(
        kernel,
        out_shape=jax.ShapeDtypeStruct((R, 2), x.dtype),
        grid_spec=pltpu.PrefetchScalarGridSpec(
            num_scalar_prefetch=0,
            grid=grid,
            in_specs=[pl.BlockSpec((row_tile, l_tile), lambda i, k: (i, k))],
            out_specs=pl.BlockSpec((row_tile, 2), lambda i, k: (i, 0)),
            scratch_shapes=[
                pltpu.VMEM((row_tile, 128), jnp.float32),
                pltpu.VMEM((row_tile, 128), jnp.float32),
            ],
        ),
        compiler_params=pltpu.CompilerParams(
            dimension_semantics=("parallel", "arbitrary"),
            vmem_limit_bytes=48 * 1024 * 1024,
        ),
        cost_estimate=pl.CostEstimate(
            flops=3 * R * L,
            transcendentals=0,
            bytes_accessed=R * L * itemsize + 2 * R * itemsize,
        ),
    )(x2)

    # (R, 2) -> (N, C, 2) -> (N, 2, C) -> (N, 2C): [mean | var] like torch.cat.
    out_nc2 = out2.reshape(N, C, 2)
    return jnp.transpose(out_nc2, (0, 2, 1)).reshape(N, 2 * C)


if __name__ == "__main__":
    key = jax.random.PRNGKey(0)
    x = jax.random.normal(key, (2, 4, 16, 16), dtype=jnp.float32)

    out = mean_std(x)
    jax.block_until_ready(out)

    # correctness check against plain JAX reference
    x3 = x.reshape(2, 4, -1)
    ref_mean = jnp.mean(x3, axis=2)
    ref_var = jnp.mean(x3 ** 2, axis=2) - ref_mean * ref_mean
    ref = jnp.concatenate([ref_mean, ref_var], axis=1)
    np.testing.assert_allclose(np.asarray(out), np.asarray(ref), rtol=1e-5, atol=1e-5)

    print("KERNEL_OK")
</pallas_src>

<mosaic_0001>
module attributes {stable_mosaic.version = 11 : i64} {
  func.func @meanstd_kernel(%arg0: i32, %arg1: i32, %arg2: memref<8x256xf32, #tpu.memory_space<vmem>>, %arg3: memref<8x2xf32, #tpu.memory_space<vmem>>, %arg4: memref<8x128xf32, #tpu.memory_space<vmem>>, %arg5: memref<8x128xf32, #tpu.memory_space<vmem>>) attributes {dimension_semantics = [#tpu.dimension_semantics<parallel>, #tpu.dimension_semantics<arbitrary>], iteration_bounds = array<i64: 1, 1>, scalar_prefetch = 0 : i64, scratch_operands = 2 : i64, tpu.core_type = #tpu.core_type<tc>, window_params = [{transform_indices = @transform_0, window_bounds = array<i64: 8, 256>}, {transform_indices = @transform_1, window_bounds = array<i64: 8, 2>}]} {
    %c0_i32 = arith.constant 0 : i32
    %0 = arith.cmpi eq, %arg1, %c0_i32 : i32
    %1 = arith.extui %0 : i1 to i32
    %c0_i32_0 = arith.constant 0 : i32
    %2 = arith.cmpi ne, %1, %c0_i32_0 : i32
    scf.if %2 {
      %cst_15 = arith.constant 0.000000e+00 : f32
      %28 = vector.broadcast %cst_15 : f32 to vector<8x128xf32>
      %c0_16 = arith.constant 0 : index
      %c0_17 = arith.constant 0 : index
      %29 = vector.load %arg4[%c0_16, %c0_17] : memref<8x128xf32, #tpu.memory_space<vmem>>, vector<8x128xf32>
      tpu.vector_store %arg4[%c0_16, %c0_17], %28 {strides = array<i32>} : memref<8x128xf32, #tpu.memory_space<vmem>>, vector<8x128xf32>,
      %cst_18 = arith.constant 0.000000e+00 : f32
      %30 = vector.broadcast %cst_18 : f32 to vector<8x128xf32>
      %c0_19 = arith.constant 0 : index
      %c0_20 = arith.constant 0 : index
      %31 = vector.load %arg5[%c0_19, %c0_20] : memref<8x128xf32, #tpu.memory_space<vmem>>, vector<8x128xf32>
      tpu.vector_store %arg5[%c0_19, %c0_20], %30 {strides = array<i32>} : memref<8x128xf32, #tpu.memory_space<vmem>>, vector<8x128xf32>,
    } else {
    }
    %cst = arith.constant 0.000000e+00 : f32
    %3 = vector.broadcast %cst : f32 to vector<8x128xf32>
    %cst_1 = arith.constant 0.000000e+00 : f32
    %4 = vector.broadcast %cst_1 : f32 to vector<8x128xf32>
    %c0_i32_2 = arith.constant 0 : i32
    %c128_i32 = arith.constant 128 : i32
    %5 = arith.muli %c0_i32_2, %c128_i32 : i32
    %6 = tpu.assume_multiple %5, 128 : i32
    %c0 = arith.constant 0 : index
    %7 = arith.index_cast %6 : i32 to index
    %8 = vector.load %arg2[%c0, %7] : memref<8x256xf32, #tpu.memory_space<vmem>>, vector<8x128xf32>
    %9 = arith.addf %3, %8 : vector<8x128xf32>
    %10 = arith.mulf %8, %8 : vector<8x128xf32>
    %11 = arith.addf %4, %10 : vector<8x128xf32>
    %c1_i32 = arith.constant 1 : i32
    %c128_i32_3 = arith.constant 128 : i32
    %12 = arith.muli %c1_i32, %c128_i32_3 : i32
    %13 = tpu.assume_multiple %12, 128 : i32
    %c0_4 = arith.constant 0 : index
    %14 = arith.index_cast %13 : i32 to index
    %15 = vector.load %arg2[%c0_4, %14] : memref<8x256xf32, #tpu.memory_space<vmem>>, vector<8x128xf32>
    %16 = arith.addf %9, %15 : vector<8x128xf32>
    %17 = arith.mulf %15, %15 : vector<8x128xf32>
    %18 = arith.addf %11, %17 : vector<8x128xf32>
    %c2_i32 = arith.constant 2 : i32
    %c0_5 = arith.constant 0 : index
    %c0_6 = arith.constant 0 : index
    %19 = vector.load %arg4[%c0_5, %c0_6] : memref<8x128xf32, #tpu.memory_space<vmem>>, vector<8x128xf32>
    %20 = arith.addf %19, %16 : vector<8x128xf32>
    %c0_7 = arith.constant 0 : index
    %c0_8 = arith.constant 0 : index
    %21 = vector.load %arg4[%c0_7, %c0_8] : memref<8x128xf32, #tpu.memory_space<vmem>>, vector<8x128xf32>
    tpu.vector_store %arg4[%c0_7, %c0_8], %20 {strides = array<i32>} : memref<8x128xf32, #tpu.memory_space<vmem>>, vector<8x128xf32>,
    %c0_9 = arith.constant 0 : index
    %c0_10 = arith.constant 0 : index
    %22 = vector.load %arg5[%c0_9, %c0_10] : memref<8x128xf32, #tpu.memory_space<vmem>>, vector<8x128xf32>
    %23 = arith.addf %22, %18 : vector<8x128xf32>
    %c0_11 = arith.constant 0 : index
    %c0_12 = arith.constant 0 : index
    %24 = vector.load %arg5[%c0_11, %c0_12] : memref<8x128xf32, #tpu.memory_space<vmem>>, vector<8x128xf32>
    tpu.vector_store %arg5[%c0_11, %c0_12], %23 {strides = array<i32>} : memref<8x128xf32, #tpu.memory_space<vmem>>, vector<8x128xf32>,
    %c0_i32_13 = arith.constant 0 : i32
    %25 = arith.cmpi eq, %arg1, %c0_i32_13 : i32
    %26 = arith.extui %25 : i1 to i32
    %c0_i32_14 = arith.constant 0 : i32
    %27 = arith.cmpi ne, %26, %c0_i32_14 : i32
    scf.if %27 {
      %c0_15 = arith.constant 0 : index
      %c0_16 = arith.constant 0 : index
      %28 = vector.load %arg4[%c0_15, %c0_16] : memref<8x128xf32, #tpu.memory_space<vmem>>, vector<8x128xf32>
      %cst_17 = arith.constant dense<0.000000e+00> : vector<8xf32>
      %29 = vector.multi_reduction <add>, %28, %cst_17 [1] : vector<8x128xf32> to vector<8xf32>
      %30 = vector.shape_cast %29 : vector<8xf32> to vector<8x1xf32>
      %cst_18 = arith.constant 3.906250e-03 : f32
      %31 = vector.broadcast %cst_18 : f32 to vector<8x1xf32>
      %32 = arith.mulf %30, %31 : vector<8x1xf32>
      %c0_19 = arith.constant 0 : index
      %c0_20 = arith.constant 0 : index
      %33 = vector.load %arg5[%c0_19, %c0_20] : memref<8x128xf32, #tpu.memory_space<vmem>>, vector<8x128xf32>
      %cst_21 = arith.constant dense<0.000000e+00> : vector<8xf32>
      %34 = vector.multi_reduction <add>, %33, %cst_21 [1] : vector<8x128xf32> to vector<8xf32>
      %35 = vector.shape_cast %34 : vector<8xf32> to vector<8x1xf32>
      %cst_22 = arith.constant 3.906250e-03 : f32
      %36 = vector.broadcast %cst_22 : f32 to vector<8x1xf32>
      %37 = arith.mulf %35, %36 : vector<8x1xf32>
      %38 = arith.mulf %32, %32 : vector<8x1xf32>
      %39 = arith.subf %37, %38 : vector<8x1xf32>
      %40 = tpu.concatenate %32, %39 in 1 : vector<8x1xf32>, vector<8x1xf32> -> vector<8x2xf32>
      %c0_23 = arith.constant 0 : index
      %c0_24 = arith.constant 0 : index
      %41 = vector.load %arg3[%c0_23, %c0_24] : memref<8x2xf32, #tpu.memory_space<vmem>>, vector<8x2xf32>
      tpu.vector_store %arg3[%c0_23, %c0_24], %40 {strides = array<i32>} : memref<8x2xf32, #tpu.memory_space<vmem>>, vector<8x2xf32>,
    } else {
    }
    return
  }
  func.func @transform_0(%arg0: i32, %arg1: i32) -> (i32, i32) {
    %c0_i32 = arith.constant 0 : i32
    return %arg0, %arg1 : i32, i32
  }
  func.func @transform_1(%arg0: i32, %arg1: i32) -> (i32, i32) {
    %c0_i32 = arith.constant 0 : i32
    %c0_i32_0 = arith.constant 0 : i32
    return %arg0, %c0_i32 : i32, i32
  }
}

</mosaic_0001>

<bundles_post_ra>
// kernel: tpu_custom_call.1
= control target key start
LH: loop header
LB: loop body
LE: loop exit
PB: predicated region body
PF: predicated region fallthrough
CT: control target
= control target key end

     0   :  { %6 = vsyncpa [#allocation5], 0  ;;  %s92_s9 = smov [#allocation4]   ;;  %s109_s0 = inlined_call_operand.hbm [shape: f32[8,256], index: 0, kind: input, shape index: {}]   ;;  %s110_s1 = inlined_call_operand.vmem [shape: f32[8,2], index: 1, kind: output, shape index: {}]  }
   0x1   :  { %s12_s8 = sshll.u32 %s109_s0, 4  ;;  %s14_s10 = sshll.u32 %s92_s9, 4  ;;  %s13_s8 = int_to_ptr.hbm [resolvable:$true] %s12_s8  ;;  %s15_s10 = int_to_ptr.vmem [resolvable:$true] %s14_s10 }
   0x2   :  { %17 = dma.hbm_to_vmem [thread:$0]  %s13_s8, 256, %s15_s10, [#allocation5]  }
   0x3   :  { %90 = dma.done.wait [#allocation5], 256  }
   0x4   :  { %91 = vsyncadd [#allocation5], 4294967040  ;;  %v28_v0 = vld [vmem:[#allocation4] sm:$0xff]  ;;  %v33_v1 = vld [vmem:[#allocation4 + $0x8] sm:$0xff]  ;;  %vm56_vm0 = vcmask 7168   ;;  %vm58_vm1 = vcmask 15360  }
   0x5   :  { %v34_v2 = vadd.f32 %v33_v1, %v28_v0  ;;  %v35_v3 = vmul.f32 %v33_v1, %v33_v1  ;;  %v30_v4 = vmul.f32 %v28_v0, %v28_v0 }
   0x7   :  { %47 = vadd.xlane.f32.xlu0 %v34_v2  ;;  %v36_v5 = vadd.f32 %v35_v3, %v30_v4 }
   0xf   :  { %51 = vadd.xlane.f32.xlu0 %v36_v5 }
  0x7a   :  { %v48_v6 = vpop.xlane.xlu0 %47 }
  0x7b   :  { %v49_v7 = vmul.f32 0.00390625, %v48_v6 }
  0x7d   :  { %v54_v9 = vmul.f32 %v49_v7, %v49_v7 }
  0x82   :  { %v52_v8 = vpop.xlane.xlu0 %51 }
  0x83   :  { %v53_v10 = vmul.f32 0.00390625, %v52_v8 }
  0x85   :  { %v55_v11 = vsub.f32 %v53_v10, %v54_v9 }
  0x87   :  { %v57_v12 = vsel %vm56_vm0, %v49_v7, %v55_v11 }
  0x88   :  { %59 = vst.msk [vmem:[%s110_s1] sm:$0xff] %vm58_vm1, %v57_v12 }
  0x89   :  { %64 = vsyncpa [#allocation5], 1 }

</bundles_post_ra>
